<compile_context>
chip_gen: v6e
topology: v6e:2x2x1
jax: 0.10.0
libtpu: 0.0.40
codegen_flags: <defaults>
</compile_context>

<pallas_src>
import jax
import jax.numpy as jnp
import numpy as np
from jax.experimental import pallas as pl
from jax.experimental.pallas import tpu as pltpu


def _recip(x):
    """EUP approx reciprocal + one Newton-Raphson refinement (~f32 accurate)."""
    r = pl.reciprocal(x, approx=True)
    return r * (2.0 - x * r)


def _make_vg_loss_kernel(num_layers, box_xyxy):
    """Builds a kernel taking (scale, gt, src_0..src_{L-1}) -> (L, 2) losses."""

    def kernel(scale_ref, gt_ref, *refs):
        # scale_ref: (1, 1) f32 SMEM   -- 1 / num_pos
        # gt_ref:    (B, 4)  VMEM      -- ground-truth boxes (one per batch elem)
        # refs[:L]:  (B, Q, 4) VMEM    -- predicted boxes, one ref per layer
        # refs[L]:   (L, 2) f32 SMEM   -- row l = [l1 loss, giou loss] of layer l
        src_refs = refs[:num_layers]
        out_ref = refs[num_layers]

        inv_num_pos = scale_ref[0, 0]

        gt = gt_ref[...].astype(jnp.float32)          # (B, 4)
        B = gt.shape[0]
        Q = src_refs[0].shape[1]

        # Hoisted lane-broadcasts of the GT coordinates: one broadcast per
        # coordinate, shared by every layer and every subsequent op.
        t0 = jnp.broadcast_to(gt[:, 0:1], (B, Q))
        t1 = jnp.broadcast_to(gt[:, 1:2], (B, Q))
        t2 = jnp.broadcast_to(gt[:, 2:3], (B, Q))
        t3 = jnp.broadcast_to(gt[:, 3:4], (B, Q))

        def to_xyxy(c0, c1, c2, c3):
            if box_xyxy:
                return c0, c1, c2, c3
            return c0 - 0.5 * c2, c1 - 0.5 * c3, c0 + 0.5 * c2, c1 + 0.5 * c3

        tx1, ty1, tx2, ty2 = to_xyxy(t0, t1, t2, t3)  # dense (B, Q) planes
        area_t = (tx2 - tx1) * (ty2 - ty1)            # hoisted, layer-invariant

        for l, src_ref in enumerate(src_refs):        # static Python loop over layers
            src = src_ref[...].astype(jnp.float32)    # (B, Q, 4), single dense load
            # De-interleave the 4 coords in VMEM/vregs -> dense (B, Q) planes.
            s0 = src[:, :, 0]
            s1 = src[:, :, 1]
            s2 = src[:, :, 2]
            s3 = src[:, :, 3]

            # L1 loss on raw coordinates.
            l1_plane = (jnp.abs(s0 - t0) + jnp.abs(s1 - t1)
                        + jnp.abs(s2 - t2) + jnp.abs(s3 - t3))

            sx1, sy1, sx2, sy2 = to_xyxy(s0, s1, s2, s3)
            area_s = (sx2 - sx1) * (sy2 - sy1)

            ix1 = jnp.maximum(sx1, tx1)
            iy1 = jnp.maximum(sy1, ty1)
            ix2 = jnp.minimum(sx2, tx2)
            iy2 = jnp.minimum(sy2, ty2)
            inter = jnp.maximum(ix2 - ix1, 0.0) * jnp.maximum(iy2 - iy1, 0.0)
            union = area_s + area_t - inter

            ex1 = jnp.minimum(sx1, tx1)
            ey1 = jnp.minimum(sy1, ty1)
            ex2 = jnp.maximum(sx2, tx2)
            ey2 = jnp.maximum(sy2, ty2)
            area_c = jnp.maximum(ex2 - ex1, 0.0) * jnp.maximum(ey2 - ey1, 0.0)

            # 1 - giou = 1 - iou + (area_c - union)/area_c
            #          = 2 - inter/union - union/area_c
            one_minus_giou = 2.0 - inter * _recip(union) - union * _recip(area_c)

            out_ref[l, 0] = jnp.sum(l1_plane) * inv_num_pos
            out_ref[l, 1] = jnp.sum(one_minus_giou) * inv_num_pos

    return kernel


def _loss_boxes_all_layers(pred_layers, gt_boxes, *, box_xyxy):
    """pred_layers: list of L arrays (B, Q, 4); gt_boxes: (B, 4) -> (L, 2) f32."""
    L = len(pred_layers)
    B, Q, _ = pred_layers[0].shape
    # TODO(synk): avg_across_gpus all-reduces num_pos across devices; we assume
    # world_size == 1 here (value still clamped at a minimum of 1).
    num_pos = max(float(B * Q), 1.0)
    scale = jnp.full((1, 1), 1.0 / num_pos, jnp.float32)

    kernel = _make_vg_loss_kernel(L, box_xyxy)
    smem = pltpu.MemorySpace.SMEM
    vmem = pltpu.MemorySpace.VMEM
    out = pl.pallas_call(
        kernel,
        out_shape=jax.ShapeDtypeStruct((L, 2), jnp.float32),
        # No grid: a single kernel step processes every layer (each layer is
        # only 4*B*Q floats, far below per-grid-step overhead; VMEM is ample).
        in_specs=[pl.BlockSpec(memory_space=smem),            # 1 / num_pos
                  pl.BlockSpec(memory_space=vmem)]            # (B, 4) GT boxes
                 + [pl.BlockSpec(memory_space=vmem)] * L,     # L layers, as-is
        out_specs=pl.BlockSpec(memory_space=smem),            # merged (L, 2)
    )(scale, gt_boxes, *pred_layers)
    return out


class VGCriterion:
    """JAX/Pallas equivalent of models/PAML.py::VGCriterion (loss_loc='loss_boxes')."""

    def __init__(self, weight_dict, loss_loc, box_xyxy):
        assert loss_loc == "loss_boxes"
        self.weight_dict = weight_dict
        self.box_xyxy = box_xyxy

    def __call__(self, outputs, targets):
        gt_boxes = targets["bbox"]
        layers = [outputs["pred_boxes"]]
        layers += [a["pred_boxes"] for a in outputs.get("aux_outputs", [])]
        per_layer = _loss_boxes_all_layers(layers, gt_boxes,
                                           box_xyxy=self.box_xyxy)     # (L, 2)
        losses = {"l1": per_layer[0, 0], "giou": per_layer[0, 1]}
        for i in range(len(layers) - 1):
            losses[f"l1_{i}"] = per_layer[i + 1, 0]
            losses[f"giou_{i}"] = per_layer[i + 1, 1]
        return losses


# ---- pure-JAX reference for verification ---------------------------------
def _ref_loss_boxes(pred_boxes, gt_boxes, box_xyxy):
    B, Q, _ = pred_boxes.shape
    num_pos = max(float(B * Q), 1.0)
    src = pred_boxes.reshape(-1, 4).astype(jnp.float32)
    tgt = jnp.broadcast_to(gt_boxes[:, None, :], (B, Q, 4)).reshape(-1, 4).astype(jnp.float32)
    l1 = jnp.sum(jnp.abs(src - tgt)) / num_pos

    def to_xyxy(b):
        cx, cy, w, h = b[:, 0], b[:, 1], b[:, 2], b[:, 3]
        return jnp.stack([cx - 0.5 * w, cy - 0.5 * h, cx + 0.5 * w, cy + 0.5 * h], -1)

    if not box_xyxy:
        src, tgt = to_xyxy(src), to_xyxy(tgt)
    area_s = (src[:, 2] - src[:, 0]) * (src[:, 3] - src[:, 1])
    area_t = (tgt[:, 2] - tgt[:, 0]) * (tgt[:, 3] - tgt[:, 1])
    lt = jnp.maximum(src[:, :2], tgt[:, :2])
    rb = jnp.minimum(src[:, 2:], tgt[:, 2:])
    wh = jnp.clip(rb - lt, 0.0)
    inter = wh[:, 0] * wh[:, 1]
    union = area_s + area_t - inter
    iou = inter / union
    lt = jnp.minimum(src[:, :2], tgt[:, :2])
    rb = jnp.maximum(src[:, 2:], tgt[:, 2:])
    wh = jnp.clip(rb - lt, 0.0)
    area_c = wh[:, 0] * wh[:, 1]
    giou = iou - (area_c - union) / area_c
    return {"l1": l1, "giou": jnp.sum(1.0 - giou) / num_pos}


if __name__ == "__main__":
    key = jax.random.PRNGKey(0)
    B, Q = 2, 8  # small shapes: batch=2, num queries=8, box dim=4
    k1, k2, k3, k4 = jax.random.split(key, 4)

    # cxcywh boxes in (0, 1)
    pred_boxes = jax.nn.sigmoid(jax.random.normal(k1, (B, Q, 4), jnp.float32))
    gt_boxes = jax.nn.sigmoid(jax.random.normal(k2, (B, 4), jnp.float32))
    aux0 = jax.nn.sigmoid(jax.random.normal(k3, (B, Q, 4), jnp.float32))
    aux1 = jax.nn.sigmoid(jax.random.normal(k4, (B, Q, 4), jnp.float32))

    outputs = {
        "pred_boxes": pred_boxes,
        "aux_outputs": [{"pred_boxes": aux0}, {"pred_boxes": aux1}],
    }
    targets = {"bbox": gt_boxes}

    criterion = VGCriterion(
        weight_dict={"loss_bbox": 5.0, "loss_giou": 2.0},
        loss_loc="loss_boxes",
        box_xyxy=False,
    )

    losses = criterion(outputs, targets)
    losses = {k: jax.block_until_ready(v) for k, v in losses.items()}

    # correctness check vs pure-JAX reference
    ref = {}
    ref.update(_ref_loss_boxes(pred_boxes, gt_boxes, False))
    for i, a in enumerate([aux0, aux1]):
        rd = _ref_loss_boxes(a, gt_boxes, False)
        ref.update({k + f"_{i}": v for k, v in rd.items()})
    for k in losses:
        np.testing.assert_allclose(np.asarray(losses[k]), np.asarray(ref[k]),
                                   rtol=1e-5, atol=1e-5)

    print("KERNEL_OK")
</pallas_src>

<mosaic_0001>
module attributes {stable_mosaic.version = 11 : i64} {
  func.func @kernel(%arg0: memref<1x1xf32, #tpu.memory_space<smem>>, %arg1: memref<2x4xf32, #tpu.memory_space<vmem>>, %arg2: memref<2x8x4xf32, #tpu.memory_space<vmem>>, %arg3: memref<2x8x4xf32, #tpu.memory_space<vmem>>, %arg4: memref<2x8x4xf32, #tpu.memory_space<vmem>>, %arg5: memref<3x2xf32, #tpu.memory_space<smem>>) attributes {dimension_semantics = [], scalar_prefetch = 0 : i64, scratch_operands = 0 : i64, tpu.core_type = #tpu.core_type<tc>} {
    %c0 = arith.constant 0 : index
    %c0_0 = arith.constant 0 : index
    %0 = memref.load %arg0[%c0, %c0_0] : memref<1x1xf32, #tpu.memory_space<smem>>
    %c0_1 = arith.constant 0 : index
    %c0_2 = arith.constant 0 : index
    %1 = vector.load %arg1[%c0_1, %c0_2] : memref<2x4xf32, #tpu.memory_space<vmem>>, vector<2x4xf32>
    %2 = vector.extract_strided_slice %1 {offsets = [0, 0], sizes = [2, 1], strides = [1, 1]} : vector<2x4xf32> to vector<2x1xf32>
    %3 = vector.shape_cast %2 : vector<2x1xf32> to vector<2x1xf32>
    %4 = vector.broadcast %3 : vector<2x1xf32> to vector<2x8xf32>
    %5 = vector.extract_strided_slice %1 {offsets = [0, 1], sizes = [2, 1], strides = [1, 1]} : vector<2x4xf32> to vector<2x1xf32>
    %6 = vector.shape_cast %5 : vector<2x1xf32> to vector<2x1xf32>
    %7 = vector.broadcast %6 : vector<2x1xf32> to vector<2x8xf32>
    %8 = vector.extract_strided_slice %1 {offsets = [0, 2], sizes = [2, 1], strides = [1, 1]} : vector<2x4xf32> to vector<2x1xf32>
    %9 = vector.shape_cast %8 : vector<2x1xf32> to vector<2x1xf32>
    %10 = vector.broadcast %9 : vector<2x1xf32> to vector<2x8xf32>
    %11 = vector.extract_strided_slice %1 {offsets = [0, 3], sizes = [2, 1], strides = [1, 1]} : vector<2x4xf32> to vector<2x1xf32>
    %12 = vector.shape_cast %11 : vector<2x1xf32> to vector<2x1xf32>
    %13 = vector.broadcast %12 : vector<2x1xf32> to vector<2x8xf32>
    %cst = arith.constant 5.000000e-01 : f32
    %14 = vector.broadcast %cst : f32 to vector<2x8xf32>
    %15 = arith.mulf %14, %10 : vector<2x8xf32>
    %16 = arith.subf %4, %15 : vector<2x8xf32>
    %cst_3 = arith.constant 5.000000e-01 : f32
    %17 = vector.broadcast %cst_3 : f32 to vector<2x8xf32>
    %18 = arith.mulf %17, %13 : vector<2x8xf32>
    %19 = arith.subf %7, %18 : vector<2x8xf32>
    %cst_4 = arith.constant 5.000000e-01 : f32
    %20 = vector.broadcast %cst_4 : f32 to vector<2x8xf32>
    %21 = arith.mulf %20, %10 : vector<2x8xf32>
    %22 = arith.addf %4, %21 : vector<2x8xf32>
    %cst_5 = arith.constant 5.000000e-01 : f32
    %23 = vector.broadcast %cst_5 : f32 to vector<2x8xf32>
    %24 = arith.mulf %23, %13 : vector<2x8xf32>
    %25 = arith.addf %7, %24 : vector<2x8xf32>
    %26 = arith.subf %22, %16 : vector<2x8xf32>
    %27 = arith.subf %25, %19 : vector<2x8xf32>
    %28 = arith.mulf %26, %27 : vector<2x8xf32>
    %c0_6 = arith.constant 0 : index
    %c0_7 = arith.constant 0 : index
    %c0_8 = arith.constant 0 : index
    %29 = vector.load %arg2[%c0_6, %c0_7, %c0_8] : memref<2x8x4xf32, #tpu.memory_space<vmem>>, vector<2x8x4xf32>
    %30 = vector.extract_strided_slice %29 {offsets = [0, 0, 0], sizes = [2, 8, 1], strides = [1, 1, 1]} : vector<2x8x4xf32> to vector<2x8x1xf32>
    %31 = vector.shape_cast %30 : vector<2x8x1xf32> to vector<2x8xf32>
    %32 = vector.extract_strided_slice %29 {offsets = [0, 0, 1], sizes = [2, 8, 1], strides = [1, 1, 1]} : vector<2x8x4xf32> to vector<2x8x1xf32>
    %33 = vector.shape_cast %32 : vector<2x8x1xf32> to vector<2x8xf32>
    %34 = vector.extract_strided_slice %29 {offsets = [0, 0, 2], sizes = [2, 8, 1], strides = [1, 1, 1]} : vector<2x8x4xf32> to vector<2x8x1xf32>
    %35 = vector.shape_cast %34 : vector<2x8x1xf32> to vector<2x8xf32>
    %36 = vector.extract_strided_slice %29 {offsets = [0, 0, 3], sizes = [2, 8, 1], strides = [1, 1, 1]} : vector<2x8x4xf32> to vector<2x8x1xf32>
    %37 = vector.shape_cast %36 : vector<2x8x1xf32> to vector<2x8xf32>
    %38 = arith.subf %31, %4 : vector<2x8xf32>
    %39 = math.absf %38 : vector<2x8xf32>
    %40 = arith.subf %33, %7 : vector<2x8xf32>
    %41 = math.absf %40 : vector<2x8xf32>
    %42 = arith.addf %39, %41 : vector<2x8xf32>
    %43 = arith.subf %35, %10 : vector<2x8xf32>
    %44 = math.absf %43 : vector<2x8xf32>
    %45 = arith.addf %42, %44 : vector<2x8xf32>
    %46 = arith.subf %37, %13 : vector<2x8xf32>
    %47 = math.absf %46 : vector<2x8xf32>
    %48 = arith.addf %45, %47 : vector<2x8xf32>
    %cst_9 = arith.constant 5.000000e-01 : f32
    %49 = vector.broadcast %cst_9 : f32 to vector<2x8xf32>
    %50 = arith.mulf %49, %35 : vector<2x8xf32>
    %51 = arith.subf %31, %50 : vector<2x8xf32>
    %cst_10 = arith.constant 5.000000e-01 : f32
    %52 = vector.broadcast %cst_10 : f32 to vector<2x8xf32>
    %53 = arith.mulf %52, %37 : vector<2x8xf32>
    %54 = arith.subf %33, %53 : vector<2x8xf32>
    %cst_11 = arith.constant 5.000000e-01 : f32
    %55 = vector.broadcast %cst_11 : f32 to vector<2x8xf32>
    %56 = arith.mulf %55, %35 : vector<2x8xf32>
    %57 = arith.addf %31, %56 : vector<2x8xf32>
    %cst_12 = arith.constant 5.000000e-01 : f32
    %58 = vector.broadcast %cst_12 : f32 to vector<2x8xf32>
    %59 = arith.mulf %58, %37 : vector<2x8xf32>
    %60 = arith.addf %33, %59 : vector<2x8xf32>
    %61 = arith.subf %57, %51 : vector<2x8xf32>
    %62 = arith.subf %60, %54 : vector<2x8xf32>
    %63 = arith.mulf %61, %62 : vector<2x8xf32>
    %64 = arith.maximumf %51, %16 : vector<2x8xf32>
    %65 = arith.maximumf %54, %19 : vector<2x8xf32>
    %66 = arith.minimumf %57, %22 : vector<2x8xf32>
    %67 = arith.minimumf %60, %25 : vector<2x8xf32>
    %68 = arith.subf %66, %64 : vector<2x8xf32>
    %cst_13 = arith.constant 0.000000e+00 : f32
    %69 = vector.broadcast %cst_13 : f32 to vector<2x8xf32>
    %70 = arith.maximumf %68, %69 : vector<2x8xf32>
    %71 = arith.subf %67, %65 : vector<2x8xf32>
    %cst_14 = arith.constant 0.000000e+00 : f32
    %72 = vector.broadcast %cst_14 : f32 to vector<2x8xf32>
    %73 = arith.maximumf %71, %72 : vector<2x8xf32>
    %74 = arith.mulf %70, %73 : vector<2x8xf32>
    %75 = arith.addf %63, %28 : vector<2x8xf32>
    %76 = arith.subf %75, %74 : vector<2x8xf32>
    %77 = arith.minimumf %51, %16 : vector<2x8xf32>
    %78 = arith.minimumf %54, %19 : vector<2x8xf32>
    %79 = arith.maximumf %57, %22 : vector<2x8xf32>
    %80 = arith.maximumf %60, %25 : vector<2x8xf32>
    %81 = arith.subf %79, %77 : vector<2x8xf32>
    %cst_15 = arith.constant 0.000000e+00 : f32
    %82 = vector.broadcast %cst_15 : f32 to vector<2x8xf32>
    %83 = arith.maximumf %81, %82 : vector<2x8xf32>
    %84 = arith.subf %80, %78 : vector<2x8xf32>
    %cst_16 = arith.constant 0.000000e+00 : f32
    %85 = vector.broadcast %cst_16 : f32 to vector<2x8xf32>
    %86 = arith.maximumf %84, %85 : vector<2x8xf32>
    %87 = arith.mulf %83, %86 : vector<2x8xf32>
    %88 = tpu.reciprocal %76 {approx = true} : vector<2x8xf32> -> vector<2x8xf32>
    %89 = arith.mulf %76, %88 : vector<2x8xf32>
    %cst_17 = arith.constant 2.000000e+00 : f32
    %90 = vector.broadcast %cst_17 : f32 to vector<2x8xf32>
    %91 = arith.subf %90, %89 : vector<2x8xf32>
    %92 = arith.mulf %88, %91 : vector<2x8xf32>
    %93 = arith.mulf %74, %92 : vector<2x8xf32>
    %cst_18 = arith.constant 2.000000e+00 : f32
    %94 = vector.broadcast %cst_18 : f32 to vector<2x8xf32>
    %95 = arith.subf %94, %93 : vector<2x8xf32>
    %96 = tpu.reciprocal %87 {approx = true} : vector<2x8xf32> -> vector<2x8xf32>
    %97 = arith.mulf %87, %96 : vector<2x8xf32>
    %cst_19 = arith.constant 2.000000e+00 : f32
    %98 = vector.broadcast %cst_19 : f32 to vector<2x8xf32>
    %99 = arith.subf %98, %97 : vector<2x8xf32>
    %100 = arith.mulf %96, %99 : vector<2x8xf32>
    %101 = arith.mulf %76, %100 : vector<2x8xf32>
    %102 = arith.subf %95, %101 : vector<2x8xf32>
    %103 = vector.shape_cast %48 : vector<2x8xf32> to vector<1x2x8xf32>
    %cst_20 = arith.constant dense<0.000000e+00> : vector<1xf32>
    %104 = vector.multi_reduction <add>, %103, %cst_20 [1, 2] : vector<1x2x8xf32> to vector<1xf32>
    %105 = vector.shape_cast %104 : vector<1xf32> to vector<1x1x1xf32>
    %106 = vector.extract %105[0, 0, 0] : f32 from vector<1x1x1xf32>
    %107 = arith.mulf %106, %0 : f32
    %c0_21 = arith.constant 0 : index
    %c0_22 = arith.constant 0 : index
    %108 = memref.load %arg5[%c0_21, %c0_22] : memref<3x2xf32, #tpu.memory_space<smem>>
    memref.store %107, %arg5[%c0_21, %c0_22] : memref<3x2xf32, #tpu.memory_space<smem>>
    %109 = vector.shape_cast %102 : vector<2x8xf32> to vector<1x2x8xf32>
    %cst_23 = arith.constant dense<0.000000e+00> : vector<1xf32>
    %110 = vector.multi_reduction <add>, %109, %cst_23 [1, 2] : vector<1x2x8xf32> to vector<1xf32>
    %111 = vector.shape_cast %110 : vector<1xf32> to vector<1x1x1xf32>
    %112 = vector.extract %111[0, 0, 0] : f32 from vector<1x1x1xf32>
    %113 = arith.mulf %112, %0 : f32
    %c0_24 = arith.constant 0 : index
    %c1 = arith.constant 1 : index
    %114 = memref.load %arg5[%c0_24, %c1] : memref<3x2xf32, #tpu.memory_space<smem>>
    memref.store %113, %arg5[%c0_24, %c1] : memref<3x2xf32, #tpu.memory_space<smem>>
    %c0_25 = arith.constant 0 : index
    %c0_26 = arith.constant 0 : index
    %c0_27 = arith.constant 0 : index
    %115 = vector.load %arg3[%c0_25, %c0_26, %c0_27] : memref<2x8x4xf32, #tpu.memory_space<vmem>>, vector<2x8x4xf32>
    %116 = vector.extract_strided_slice %115 {offsets = [0, 0, 0], sizes = [2, 8, 1], strides = [1, 1, 1]} : vector<2x8x4xf32> to vector<2x8x1xf32>
    %117 = vector.shape_cast %116 : vector<2x8x1xf32> to vector<2x8xf32>
    %118 = vector.extract_strided_slice %115 {offsets = [0, 0, 1], sizes = [2, 8, 1], strides = [1, 1, 1]} : vector<2x8x4xf32> to vector<2x8x1xf32>
    %119 = vector.shape_cast %118 : vector<2x8x1xf32> to vector<2x8xf32>
    %120 = vector.extract_strided_slice %115 {offsets = [0, 0, 2], sizes = [2, 8, 1], strides = [1, 1, 1]} : vector<2x8x4xf32> to vector<2x8x1xf32>
    %121 = vector.shape_cast %120 : vector<2x8x1xf32> to vector<2x8xf32>
    %122 = vector.extract_strided_slice %115 {offsets = [0, 0, 3], sizes = [2, 8, 1], strides = [1, 1, 1]} : vector<2x8x4xf32> to vector<2x8x1xf32>
    %123 = vector.shape_cast %122 : vector<2x8x1xf32> to vector<2x8xf32>
    %124 = arith.subf %117, %4 : vector<2x8xf32>
    %125 = math.absf %124 : vector<2x8xf32>
    %126 = arith.subf %119, %7 : vector<2x8xf32>
    %127 = math.absf %126 : vector<2x8xf32>
    %128 = arith.addf %125, %127 : vector<2x8xf32>
    %129 = arith.subf %121, %10 : vector<2x8xf32>
    %130 = math.absf %129 : vector<2x8xf32>
    %131 = arith.addf %128, %130 : vector<2x8xf32>
    %132 = arith.subf %123, %13 : vector<2x8xf32>
    %133 = math.absf %132 : vector<2x8xf32>
    %134 = arith.addf %131, %133 : vector<2x8xf32>
    %cst_28 = arith.constant 5.000000e-01 : f32
    %135 = vector.broadcast %cst_28 : f32 to vector<2x8xf32>
    %136 = arith.mulf %135, %121 : vector<2x8xf32>
    %137 = arith.subf %117, %136 : vector<2x8xf32>
    %cst_29 = arith.constant 5.000000e-01 : f32
    %138 = vector.broadcast %cst_29 : f32 to vector<2x8xf32>
    %139 = arith.mulf %138, %123 : vector<2x8xf32>
    %140 = arith.subf %119, %139 : vector<2x8xf32>
    %cst_30 = arith.constant 5.000000e-01 : f32
    %141 = vector.broadcast %cst_30 : f32 to vector<2x8xf32>
    %142 = arith.mulf %141, %121 : vector<2x8xf32>
    %143 = arith.addf %117, %142 : vector<2x8xf32>
    %cst_31 = arith.constant 5.000000e-01 : f32
    %144 = vector.broadcast %cst_31 : f32 to vector<2x8xf32>
    %145 = arith.mulf %144, %123 : vector<2x8xf32>
    %146 = arith.addf %119, %145 : vector<2x8xf32>
    %147 = arith.subf %143, %137 : vector<2x8xf32>
    %148 = arith.subf %146, %140 : vector<2x8xf32>
    %149 = arith.mulf %147, %148 : vector<2x8xf32>
    %150 = arith.maximumf %137, %16 : vector<2x8xf32>
    %151 = arith.maximumf %140, %19 : vector<2x8xf32>
    %152 = arith.minimumf %143, %22 : vector<2x8xf32>
    %153 = arith.minimumf %146, %25 : vector<2x8xf32>
    %154 = arith.subf %152, %150 : vector<2x8xf32>
    %cst_32 = arith.constant 0.000000e+00 : f32
    %155 = vector.broadcast %cst_32 : f32 to vector<2x8xf32>
    %156 = arith.maximumf %154, %155 : vector<2x8xf32>
    %157 = arith.subf %153, %151 : vector<2x8xf32>
    %cst_33 = arith.constant 0.000000e+00 : f32
    %158 = vector.broadcast %cst_33 : f32 to vector<2x8xf32>
    %159 = arith.maximumf %157, %158 : vector<2x8xf32>
    %160 = arith.mulf %156, %159 : vector<2x8xf32>
    %161 = arith.addf %149, %28 : vector<2x8xf32>
    %162 = arith.subf %161, %160 : vector<2x8xf32>
    %163 = arith.minimumf %137, %16 : vector<2x8xf32>
    %164 = arith.minimumf %140, %19 : vector<2x8xf32>
    %165 = arith.maximumf %143, %22 : vector<2x8xf32>
    %166 = arith.maximumf %146, %25 : vector<2x8xf32>
    %167 = arith.subf %165, %163 : vector<2x8xf32>
    %cst_34 = arith.constant 0.000000e+00 : f32
    %168 = vector.broadcast %cst_34 : f32 to vector<2x8xf32>
    %169 = arith.maximumf %167, %168 : vector<2x8xf32>
    %170 = arith.subf %166, %164 : vector<2x8xf32>
    %cst_35 = arith.constant 0.000000e+00 : f32
    %171 = vector.broadcast %cst_35 : f32 to vector<2x8xf32>
    %172 = arith.maximumf %170, %171 : vector<2x8xf32>
    %173 = arith.mulf %169, %172 : vector<2x8xf32>
    %174 = tpu.reciprocal %162 {approx = true} : vector<2x8xf32> -> vector<2x8xf32>
    %175 = arith.mulf %162, %174 : vector<2x8xf32>
    %cst_36 = arith.constant 2.000000e+00 : f32
    %176 = vector.broadcast %cst_36 : f32 to vector<2x8xf32>
    %177 = arith.subf %176, %175 : vector<2x8xf32>
    %178 = arith.mulf %174, %177 : vector<2x8xf32>
    %179 = arith.mulf %160, %178 : vector<2x8xf32>
    %cst_37 = arith.constant 2.000000e+00 : f32
    %180 = vector.broadcast %cst_37 : f32 to vector<2x8xf32>
    %181 = arith.subf %180, %179 : vector<2x8xf32>
    %182 = tpu.reciprocal %173 {approx = true} : vector<2x8xf32> -> vector<2x8xf32>
    %183 = arith.mulf %173, %182 : vector<2x8xf32>
    %cst_38 = arith.constant 2.000000e+00 : f32
    %184 = vector.broadcast %cst_38 : f32 to vector<2x8xf32>
    %185 = arith.subf %184, %183 : vector<2x8xf32>
    %186 = arith.mulf %182, %185 : vector<2x8xf32>
    %187 = arith.mulf %162, %186 : vector<2x8xf32>
    %188 = arith.subf %181, %187 : vector<2x8xf32>
    %189 = vector.shape_cast %134 : vector<2x8xf32> to vector<1x2x8xf32>
    %cst_39 = arith.constant dense<0.000000e+00> : vector<1xf32>
    %190 = vector.multi_reduction <add>, %189, %cst_39 [1, 2] : vector<1x2x8xf32> to vector<1xf32>
    %191 = vector.shape_cast %190 : vector<1xf32> to vector<1x1x1xf32>
    %192 = vector.extract %191[0, 0, 0] : f32 from vector<1x1x1xf32>
    %193 = arith.mulf %192, %0 : f32
    %c1_40 = arith.constant 1 : index
    %c0_41 = arith.constant 0 : index
    %194 = memref.load %arg5[%c1_40, %c0_41] : memref<3x2xf32, #tpu.memory_space<smem>>
    memref.store %193, %arg5[%c1_40, %c0_41] : memref<3x2xf32, #tpu.memory_space<smem>>
    %195 = vector.shape_cast %188 : vector<2x8xf32> to vector<1x2x8xf32>
    %cst_42 = arith.constant dense<0.000000e+00> : vector<1xf32>
    %196 = vector.multi_reduction <add>, %195, %cst_42 [1, 2] : vector<1x2x8xf32> to vector<1xf32>
    %197 = vector.shape_cast %196 : vector<1xf32> to vector<1x1x1xf32>
    %198 = vector.extract %197[0, 0, 0] : f32 from vector<1x1x1xf32>
    %199 = arith.mulf %198, %0 : f32
    %c1_43 = arith.constant 1 : index
    %c1_44 = arith.constant 1 : index
    %200 = memref.load %arg5[%c1_43, %c1_44] : memref<3x2xf32, #tpu.memory_space<smem>>
    memref.store %199, %arg5[%c1_43, %c1_44] : memref<3x2xf32, #tpu.memory_space<smem>>
    %c0_45 = arith.constant 0 : index
    %c0_46 = arith.constant 0 : index
    %c0_47 = arith.constant 0 : index
    %201 = vector.load %arg4[%c0_45, %c0_46, %c0_47] : memref<2x8x4xf32, #tpu.memory_space<vmem>>, vector<2x8x4xf32>
    %202 = vector.extract_strided_slice %201 {offsets = [0, 0, 0], sizes = [2, 8, 1], strides = [1, 1, 1]} : vector<2x8x4xf32> to vector<2x8x1xf32>
    %203 = vector.shape_cast %202 : vector<2x8x1xf32> to vector<2x8xf32>
    %204 = vector.extract_strided_slice %201 {offsets = [0, 0, 1], sizes = [2, 8, 1], strides = [1, 1, 1]} : vector<2x8x4xf32> to vector<2x8x1xf32>
    %205 = vector.shape_cast %204 : vector<2x8x1xf32> to vector<2x8xf32>
    %206 = vector.extract_strided_slice %201 {offsets = [0, 0, 2], sizes = [2, 8, 1], strides = [1, 1, 1]} : vector<2x8x4xf32> to vector<2x8x1xf32>
    %207 = vector.shape_cast %206 : vector<2x8x1xf32> to vector<2x8xf32>
    %208 = vector.extract_strided_slice %201 {offsets = [0, 0, 3], sizes = [2, 8, 1], strides = [1, 1, 1]} : vector<2x8x4xf32> to vector<2x8x1xf32>
    %209 = vector.shape_cast %208 : vector<2x8x1xf32> to vector<2x8xf32>
    %210 = arith.subf %203, %4 : vector<2x8xf32>
    %211 = math.absf %210 : vector<2x8xf32>
    %212 = arith.subf %205, %7 : vector<2x8xf32>
    %213 = math.absf %212 : vector<2x8xf32>
    %214 = arith.addf %211, %213 : vector<2x8xf32>
    %215 = arith.subf %207, %10 : vector<2x8xf32>
    %216 = math.absf %215 : vector<2x8xf32>
    %217 = arith.addf %214, %216 : vector<2x8xf32>
    %218 = arith.subf %209, %13 : vector<2x8xf32>
    %219 = math.absf %218 : vector<2x8xf32>
    %220 = arith.addf %217, %219 : vector<2x8xf32>
    %cst_48 = arith.constant 5.000000e-01 : f32
    %221 = vector.broadcast %cst_48 : f32 to vector<2x8xf32>
    %222 = arith.mulf %221, %207 : vector<2x8xf32>
    %223 = arith.subf %203, %222 : vector<2x8xf32>
    %cst_49 = arith.constant 5.000000e-01 : f32
    %224 = vector.broadcast %cst_49 : f32 to vector<2x8xf32>
    %225 = arith.mulf %224, %209 : vector<2x8xf32>
    %226 = arith.subf %205, %225 : vector<2x8xf32>
    %cst_50 = arith.constant 5.000000e-01 : f32
    %227 = vector.broadcast %cst_50 : f32 to vector<2x8xf32>
    %228 = arith.mulf %227, %207 : vector<2x8xf32>
    %229 = arith.addf %203, %228 : vector<2x8xf32>
    %cst_51 = arith.constant 5.000000e-01 : f32
    %230 = vector.broadcast %cst_51 : f32 to vector<2x8xf32>
    %231 = arith.mulf %230, %209 : vector<2x8xf32>
    %232 = arith.addf %205, %231 : vector<2x8xf32>
    %233 = arith.subf %229, %223 : vector<2x8xf32>
    %234 = arith.subf %232, %226 : vector<2x8xf32>
    %235 = arith.mulf %233, %234 : vector<2x8xf32>
    %236 = arith.maximumf %223, %16 : vector<2x8xf32>
    %237 = arith.maximumf %226, %19 : vector<2x8xf32>
    %238 = arith.minimumf %229, %22 : vector<2x8xf32>
    %239 = arith.minimumf %232, %25 : vector<2x8xf32>
    %240 = arith.subf %238, %236 : vector<2x8xf32>
    %cst_52 = arith.constant 0.000000e+00 : f32
    %241 = vector.broadcast %cst_52 : f32 to vector<2x8xf32>
    %242 = arith.maximumf %240, %241 : vector<2x8xf32>
    %243 = arith.subf %239, %237 : vector<2x8xf32>
    %cst_53 = arith.constant 0.000000e+00 : f32
    %244 = vector.broadcast %cst_53 : f32 to vector<2x8xf32>
    %245 = arith.maximumf %243, %244 : vector<2x8xf32>
    %246 = arith.mulf %242, %245 : vector<2x8xf32>
    %247 = arith.addf %235, %28 : vector<2x8xf32>
    %248 = arith.subf %247, %246 : vector<2x8xf32>
    %249 = arith.minimumf %223, %16 : vector<2x8xf32>
    %250 = arith.minimumf %226, %19 : vector<2x8xf32>
    %251 = arith.maximumf %229, %22 : vector<2x8xf32>
    %252 = arith.maximumf %232, %25 : vector<2x8xf32>
    %253 = arith.subf %251, %249 : vector<2x8xf32>
    %cst_54 = arith.constant 0.000000e+00 : f32
    %254 = vector.broadcast %cst_54 : f32 to vector<2x8xf32>
    %255 = arith.maximumf %253, %254 : vector<2x8xf32>
    %256 = arith.subf %252, %250 : vector<2x8xf32>
    %cst_55 = arith.constant 0.000000e+00 : f32
    %257 = vector.broadcast %cst_55 : f32 to vector<2x8xf32>
    %258 = arith.maximumf %256, %257 : vector<2x8xf32>
    %259 = arith.mulf %255, %258 : vector<2x8xf32>
    %260 = tpu.reciprocal %248 {approx = true} : vector<2x8xf32> -> vector<2x8xf32>
    %261 = arith.mulf %248, %260 : vector<2x8xf32>
    %cst_56 = arith.constant 2.000000e+00 : f32
    %262 = vector.broadcast %cst_56 : f32 to vector<2x8xf32>
    %263 = arith.subf %262, %261 : vector<2x8xf32>
    %264 = arith.mulf %260, %263 : vector<2x8xf32>
    %265 = arith.mulf %246, %264 : vector<2x8xf32>
    %cst_57 = arith.constant 2.000000e+00 : f32
    %266 = vector.broadcast %cst_57 : f32 to vector<2x8xf32>
    %267 = arith.subf %266, %265 : vector<2x8xf32>
    %268 = tpu.reciprocal %259 {approx = true} : vector<2x8xf32> -> vector<2x8xf32>
    %269 = arith.mulf %259, %268 : vector<2x8xf32>
    %cst_58 = arith.constant 2.000000e+00 : f32
    %270 = vector.broadcast %cst_58 : f32 to vector<2x8xf32>
    %271 = arith.subf %270, %269 : vector<2x8xf32>
    %272 = arith.mulf %268, %271 : vector<2x8xf32>
    %273 = arith.mulf %248, %272 : vector<2x8xf32>
    %274 = arith.subf %267, %273 : vector<2x8xf32>
    %275 = vector.shape_cast %220 : vector<2x8xf32> to vector<1x2x8xf32>
    %cst_59 = arith.constant dense<0.000000e+00> : vector<1xf32>
    %276 = vector.multi_reduction <add>, %275, %cst_59 [1, 2] : vector<1x2x8xf32> to vector<1xf32>
    %277 = vector.shape_cast %276 : vector<1xf32> to vector<1x1x1xf32>
    %278 = vector.extract %277[0, 0, 0] : f32 from vector<1x1x1xf32>
    %279 = arith.mulf %278, %0 : f32
    %c2 = arith.constant 2 : index
    %c0_60 = arith.constant 0 : index
    %280 = memref.load %arg5[%c2, %c0_60] : memref<3x2xf32, #tpu.memory_space<smem>>
    memref.store %279, %arg5[%c2, %c0_60] : memref<3x2xf32, #tpu.memory_space<smem>>
    %281 = vector.shape_cast %274 : vector<2x8xf32> to vector<1x2x8xf32>
    %cst_61 = arith.constant dense<0.000000e+00> : vector<1xf32>
    %282 = vector.multi_reduction <add>, %281, %cst_61 [1, 2] : vector<1x2x8xf32> to vector<1xf32>
    %283 = vector.shape_cast %282 : vector<1xf32> to vector<1x1x1xf32>
    %284 = vector.extract %283[0, 0, 0] : f32 from vector<1x1x1xf32>
    %285 = arith.mulf %284, %0 : f32
    %c2_62 = arith.constant 2 : index
    %c1_63 = arith.constant 1 : index
    %286 = memref.load %arg5[%c2_62, %c1_63] : memref<3x2xf32, #tpu.memory_space<smem>>
    memref.store %285, %arg5[%c2_62, %c1_63] : memref<3x2xf32, #tpu.memory_space<smem>>
    return
  }
}

</mosaic_0001>

<bundles_post_ra>
// kernel: tpu_custom_call.1
= control target key start
LH: loop header
LB: loop body
LE: loop exit
PB: predicated region body
PF: predicated region fallthrough
CT: control target
= control target key end

     0   :  { %v52_v2 = vlaneseq  ;;  %v875_v3 = vmov 3   ;;  %v876_v6 = vmov 2   ;;  %s877_s24 = smov 126   ;;  %s1448_s0 = inlined_call_operand.<no memory space> [shape: f32[1,1], index: 0, kind: input, shape index: {}]   ;;  %s1449_s1 = inlined_call_operand.vmem [shape: f32[2,4], index: 1, kind: input, shape index: {}]   ;;  %s1450_s2 = inlined_call_operand.vmem [shape: f32[2,8,4], index: 2, kind: input, shape index: {}]   ;;  %s1451_s3 = inlined_call_operand.vmem [shape: f32[2,8,4], index: 3, kind: input, shape index: {}]   ;;  %s1452_s4 = inlined_call_operand.vmem [shape: f32[2,8,4], index: 4, kind: input, shape index: {}]   ;;  %s1453_s5 = inlined_call_operand.vmem [shape: f32[3,2], index: 5, kind: output, shape index: {}]  }
   0x1   :  { %v23_v0 = vld [vmem:[%s1449_s1] sm:$0x3]  ;;  %832 = vset.pattern.permute.xlu0 %v875_v3  ;;  %v925_v5 = vld [vmem:[%s1450_s2 + $0x8] sm:$0xff]  ;;  %834 = vset.pattern.permute.xlu1 %v876_v6 }
   0x2   :  { %v919_v1 = vld [vmem:[%s1450_s2] sm:$0xff]  ;;  %38 = vperm.xlu0 %832, %v23_v0   ;;  %v139_v7 = vmul.f32 0.5, %v925_v5  ;;  %v53_v8 = vshrl.u32 %v52_v2, 7  ;;  %v308_v9 = vand.u32 127, %v52_v2 }
   0x3   :  { %v138_v4 = vmul.f32 0.5, %v919_v1 }
   0x5   :  { %142 = vrot.lane.b32.xlu1 %v138_v4, %s877_s24 }
   0x6   :  { %11 = vsyncpa [#allocation4], 0  ;;  %v932_v10 = vld [vmem:[%s1451_s3] sm:$0xff]  ;;  %v937_v11 = vld [vmem:[%s1451_s3 + $0x8] sm:$0xff]  ;;  %v939_v12 = vsub.s32 %v308_v9, %v53_v8  ;;  %v878_v13 = vmov 1   ;;  %v879_v20 = vmov 0  }
   0x7   :  { %833 = vset.pattern.permute.xlu0 %v878_v13  ;;  %v413_v14 = vmul.f32 0.5, %v932_v10  ;;  %v414_v15 = vmul.f32 0.5, %v937_v11  ;;  %v947_v16 = vld [vmem:[%s1452_s4] sm:$0xff]  ;;  %v952_v17 = vld [vmem:[%s1452_s4 + $0x8] sm:$0xff]  ;;  %s880_s3 = smov 127   ;;  %v996_v34 = vsub.s32 0, %v53_v8 }
   0x8   :  { %30 = vperm.xlu0 %833, %v23_v0   ;;  %v629_v18 = vmul.f32 0.5, %v947_v16  ;;  %v630_v19 = vmul.f32 0.5, %v952_v17  ;;  %v1021_v47 = vsub.s32 1, %v53_v8  ;;  %s881_s4 = smov 125   ;;  %vm317_vm0 = vcmask 1041409   ;;  %s803_s27 = sshll.u32 %s1453_s5, 4  ;;  %s804_s27 = int_to_ptr.vmem [resolvable:$true] %s803_s27 }
   0x9   :  { %144 = vrot.lane.b32.xlu1 %v139_v7, %s877_s24  ;;  %vm320_vm1 = vcmask 58368   ;;  %p866_p1 = scmp.lt.s32.totalorder %s804_s27, %s804_s27 }
   0xc   :  { %419 = vrot.lane.b32.xlu0 %v414_v15, %s877_s24 }
   0xd   :  { %417 = vrot.lane.b32.xlu1 %v413_v14, %s877_s24  ;;  %835 = vset.pattern.permute.xlu0 %v879_v20 }
  0x10   :  { %635 = vrot.lane.b32.xlu0 %v630_v19, %s877_s24 }
  0x11   :  { %633 = vrot.lane.b32.xlu1 %v629_v18, %s877_s24 }
  0x14   :  { %26 = vperm.xlu0 %835, %v23_v0  }
  0x15   :  { %34 = vperm.xlu1 %834, %v23_v0  }
  0x19   :  { %836 = vset.pattern.permute.xlu1 %v879_v20 }
  0x77   :  { %v143_v21 = vpop.permute.xlu1 %142 }
  0x78   :  { %v961_v22 = vsub.f32 %v919_v1, %v143_v21  ;;  %v964_v23 = vadd.f32 %v143_v21, %v919_v1 }
  0x7a   :  { %v968_v24 = vsub.f32 %v964_v23, %v961_v22 }
  0x7b   :  { %v145_v25 = vpop.permute.xlu1 %144 }
  0x7c   :  { %v971_v26 = vsub.f32 %v925_v5, %v145_v25  ;;  %v974_v27 = vadd.f32 %v145_v25, %v925_v5  ;;  %156 = vrot.lane.b32.xlu1 %v968_v24, %s880_s3 }
  0x7d   :  { %v982_v30 = vpop.permute.xlu0 %38 }
  0x7e   :  { %v980_v28 = vsub.f32 %v974_v27, %v971_v26  ;;  %v43_v35 = vmul.f32 0.5, %v982_v30 }
  0x7f   :  { %v418_v29 = vpop.permute.xlu1 %417 }
  0x80   :  { %v985_v31 = vsub.f32 %v932_v10, %v418_v29  ;;  %v988_v32 = vadd.f32 %v418_v29, %v932_v10  ;;  %158 = vrot.lane.b32.xlu1 %v980_v28, %s880_s3 }
  0x82   :  { %v994_v33 = vsub.f32 %v988_v32, %v985_v31 }
  0x83   :  { %v634_v36 = vpop.permute.xlu1 %633  ;;  %v31_v39 = vpop.permute.xlu0 %30 }
  0x84   :  { %v1000_v37 = vsub.f32 %v947_v16, %v634_v36  ;;  %v1003_v38 = vadd.f32 %v634_v36, %v947_v16  ;;  %431 = vrot.lane.b32.xlu0 %v994_v33, %s880_s3  ;;  %v1007_v40 = vsub.f32 %v31_v39, %v43_v35  ;;  %v1009_v41 = vadd.f32 %v43_v35, %v31_v39 }
  0x85   :  { %v69_v42 = vrot.slane %v31_v39, %v996_v34  ;;  %v73_v54 = vrot.slane %v31_v39, %v1021_v47 }
  0x86   :  { %v1014_v43 = vsub.f32 %v1003_v38, %v1000_v37  ;;  %v48_v44 = vsub.f32 %v1009_v41, %v1007_v40  ;;  %v1031_v50 = vrot.slane %v1007_v40, %v996_v34  ;;  %v1035_v51 = vrot.slane %v1009_v41, %v996_v34 }
  0x87   :  { %v420_v45 = vpop.permute.xlu0 %419  ;;  %v76_v46 = vsub.f32 %v919_v1, %v69_v42  ;;  %v371_v53 = vsub.f32 %v932_v10, %v69_v42  ;;  %v587_v60 = vsub.f32 %v947_v16, %v69_v42  ;;  %v77_v0 = vsub.f32 %v925_v5, %v73_v54 }
  0x88   :  { %647 = vrot.lane.b32.xlu0 %v1014_v43, %s880_s3  ;;  %v1024_v48 = vsub.f32 %v937_v11, %v420_v45  ;;  %v1027_v49 = vadd.f32 %v420_v45, %v937_v11  ;;  %v188_v61 = vmax.f32 %v961_v22, %v1031_v50  ;;  %v214_v62 = vmin.f32 %v964_v23, %v1035_v51 }
  0x89   :  { %v78_v52 = vand.u32 2147483647, %v76_v46  ;;  %v373_v59 = vand.u32 2147483647, %v371_v53  ;;  %v1064_v2 = vrot.slane %v1007_v40, %v1021_v47  ;;  %v1068_v3 = vrot.slane %v1009_v41, %v1021_v47 }
  0x8a   :  { %v1041_v55 = vsub.f32 %v1027_v49, %v1024_v48  ;;  %v589_v8 = vand.u32 2147483647, %v587_v60  ;;  %v220_v9 = vsub.f32 %v214_v62, %v188_v61  ;;  %v441_v13 = vmax.f32 %v985_v31, %v1031_v50 }
  0x8b   :  { %v636_v56 = vpop.permute.xlu0 %635  ;;  %v445_v14 = vmin.f32 %v988_v32, %v1035_v51  ;;  %v79_v15 = vand.u32 2147483647, %v77_v0  ;;  %v372_v18 = vsub.f32 %v937_v11, %v73_v54  ;;  %v657_v19 = vmax.f32 %v1000_v37, %v1031_v50 }
  0x8c   :  { %82 = vrot.lane.b32.xlu0 %v78_v52, %s880_s3  ;;  %v1045_v57 = vsub.f32 %v952_v17, %v636_v56  ;;  %v1048_v58 = vadd.f32 %v636_v56, %v952_v17  ;;  %433 = vrot.lane.b32.xlu1 %v1041_v55, %s880_s3  ;;  %v661_v20 = vmin.f32 %v1003_v38, %v1035_v51  ;;  %v222_v36 = vmax.f32 %v220_v9, 0.0 }
  0x8d   :  { %v189_v21 = vmax.f32 %v971_v26, %v1064_v2  ;;  %v215_v25 = vmin.f32 %v974_v27, %v1068_v3  ;;  %v451_v39 = vsub.f32 %v445_v14, %v441_v13  ;;  %v374_v42 = vand.u32 2147483647, %v372_v18 }
  0x8e   :  { %v1059_v63 = vsub.f32 %v1048_v58, %v1045_v57  ;;  %v588_v45 = vsub.f32 %v952_v17, %v73_v54  ;;  %v667_v46 = vsub.f32 %v661_v20, %v657_v19  ;;  %v251_v52 = vmin.f32 %v961_v22, %v1031_v50 }
  0x8f   :  { %v1076_v7 = vpop.permute.xlu0 %26  ;;  %v221_v53 = vsub.f32 %v215_v25, %v189_v21  ;;  %v255_v56 = vmax.f32 %v964_v23, %v1035_v51  ;;  %v446_v60 = vmin.f32 %v1027_v49, %v1068_v3  ;;  %v471_v54 = vmin.f32 %v985_v31, %v1031_v50 }
  0x90   :  { %v1070_v4 = vpop.permute.xlu1 %34  ;;  %377 = vrot.lane.b32.xlu0 %v373_v59, %s880_s3  ;;  %649 = vrot.lane.b32.xlu1 %v1059_v63, %s880_s3  ;;  %v442_v59 = vmax.f32 %v1024_v48, %v1064_v2  ;;  %v475_v62 = vmax.f32 %v988_v32, %v1035_v51  ;;  %v453_v0 = vmax.f32 %v451_v39, 0.0  ;;  %v669_v9 = vmax.f32 %v667_v46, 0.0 }
  0x91   :  { %v41_v6 = vmul.f32 0.5, %v1070_v4  ;;  %v223_v13 = vmax.f32 %v221_v53, 0.0  ;;  %v261_v14 = vsub.f32 %v255_v56, %v251_v52  ;;  %v658_v25 = vmax.f32 %v1045_v57, %v1064_v2 }
  0x92   :  { %v481_v20 = vsub.f32 %v475_v62, %v471_v54  ;;  %v687_v39 = vmin.f32 %v1000_v37, %v1031_v50  ;;  %v256_v46 = vmax.f32 %v974_v27, %v1068_v3 }
  0x93   :  { %v42_v29 = vsub.f32 %v1076_v7, %v41_v6  ;;  %v45_v35 = vadd.f32 %v41_v6, %v1076_v7  ;;  %v1112_v6 = vrot.slane %v1070_v4, %v996_v34 }
  0x94   :  { %593 = vrot.lane.b32.xlu0 %v589_v8, %s880_s3  ;;  %84 = vrot.lane.b32.xlu1 %v79_v15, %s880_s3  ;;  %v590_v8 = vand.u32 2147483647, %v588_v45  ;;  %v452_v15 = vsub.f32 %v446_v60, %v442_v59  ;;  %v252_v45 = vmin.f32 %v971_v26, %v1064_v2  ;;  %v483_v53 = vmax.f32 %v481_v20, 0.0 }
  0x95   :  { %v47_v61 = vsub.f32 %v45_v35, %v42_v29  ;;  %v1116_v18 = vrot.slane %v42_v29, %v996_v34  ;;  %v1119_v19 = vrot.slane %v45_v35, %v996_v34  ;;  %v1147_v50 = vrot.slane %v45_v35, %v1021_v47 }
  0x96   :  { %v454_v52 = vmax.f32 %v452_v15, 0.0  ;;  %v100_v35 = vsub.f32 %v919_v1, %v1112_v6 }
  0x97   :  { %v49_v21 = vmul.f32 %v48_v44, %v47_v61  ;;  %v1144_v44 = vrot.slane %v42_v29, %v1021_v47  ;;  %v175_v56 = vmax.f32 %v961_v22, %v1116_v18  ;;  %v201_v59 = vmin.f32 %v964_v23, %v1119_v19 }
  0x98   :  { %226 = vrot.lane.b32.xlu0 %v222_v36, %s880_s3  ;;  %379 = vrot.lane.b32.xlu1 %v374_v42, %s880_s3  ;;  %v662_v36 = vmin.f32 %v1048_v58, %v1068_v3  ;;  %v691_v42 = vmax.f32 %v1003_v38, %v1035_v51  ;;  %v263_v51 = vmax.f32 %v261_v14, 0.0  ;;  %v439_v29 = vmax.f32 %v985_v31, %v1116_v18 }
  0x99   :  { %v1138_v40 = vrot.slane %v49_v21, %v996_v34  ;;  %v1141_v41 = vrot.slane %v49_v21, %v1021_v47  ;;  %v472_v61 = vmin.f32 %v1024_v48, %v1064_v2  ;;  %v443_v54 = vmin.f32 %v988_v32, %v1119_v19 }
  0x9a   :  { %v668_v60 = vsub.f32 %v662_v36, %v658_v25  ;;  %v697_v62 = vsub.f32 %v691_v42, %v687_v39  ;;  %v659_v14 = vmin.f32 %v1003_v38, %v1119_v19  ;;  %v176_v15 = vmax.f32 %v971_v26, %v1144_v44 }
  0x9b   :  { %v202_v20 = vmin.f32 %v974_v27, %v1147_v50  ;;  %v476_v21 = vmax.f32 %v1027_v49, %v1068_v3  ;;  %v385_v25 = vsub.f32 %v932_v10, %v1112_v6  ;;  %v249_v36 = vmin.f32 %v961_v22, %v1116_v18 }
  0x9c   :  { %457 = vrot.lane.b32.xlu0 %v453_v0, %s880_s3  ;;  %595 = vrot.lane.b32.xlu1 %v590_v8, %s880_s3  ;;  %v262_v0 = vsub.f32 %v256_v46, %v252_v45  ;;  %v1163_v8 = vsub.f32 %v201_v59, %v175_v56  ;;  %v253_v39 = vmax.f32 %v964_v23, %v1119_v19  ;;  %v670_v42 = vmax.f32 %v668_v60, 0.0 }
  0x9d   :  { %v1187_v46 = vsub.f32 %v202_v20, %v176_v15  ;;  %v444_v56 = vmin.f32 %v1027_v49, %v1147_v50  ;;  %v469_v59 = vmin.f32 %v985_v31, %v1116_v18  ;;  %v473_v22 = vmax.f32 %v988_v32, %v1119_v19 }
  0x9e   :  { %v688_v23 = vmin.f32 %v1045_v57, %v1064_v2  ;;  %v656_v60 = vmax.f32 %v1045_v57, %v1144_v44  ;;  %v699_v31 = vmax.f32 %v697_v62, 0.0  ;;  %v254_v15 = vmax.f32 %v974_v27, %v1147_v50 }
  0x9f   :  { %v1211_v32 = vsub.f32 %v473_v22, %v469_v59  ;;  %v264_v20 = vmax.f32 %v262_v0, 0.0  ;;  %v482_v62 = vsub.f32 %v476_v21, %v472_v61  ;;  %v97_v27 = vrot.slane %v1070_v4, %v1021_v47 }
  0xa0   :  { %673 = vrot.lane.b32.xlu0 %v669_v9, %s880_s3  ;;  %228 = vrot.lane.b32.xlu1 %v223_v13, %s880_s3  ;;  %v655_v9 = vmax.f32 %v1000_v37, %v1116_v18  ;;  %v1168_v13 = vsub.f32 %v443_v54, %v439_v29  ;;  %v692_v29 = vmax.f32 %v1048_v58, %v1068_v3  ;;  %v387_v0 = vand.u32 2147483647, %v385_v25 }
  0xa1   :  { %v660_v54 = vmin.f32 %v1048_v58, %v1147_v50  ;;  %v689_v3 = vmax.f32 %v1003_v38, %v1119_v19  ;;  %v101_v4 = vsub.f32 %v925_v5, %v97_v27  ;;  %v386_v25 = vsub.f32 %v937_v11, %v97_v27 }
  0xa2   :  { %v1185_v45 = vsub.f32 %v659_v14, %v655_v9  ;;  %v250_v14 = vmin.f32 %v971_v26, %v1144_v44  ;;  %v686_v26 = vmin.f32 %v1045_v57, %v1144_v44  ;;  %v698_v61 = vsub.f32 %v692_v29, %v688_v23 }
  0xa3   :  { %v1215_v2 = vsub.f32 %v660_v54, %v656_v60  ;;  %v601_v57 = vsub.f32 %v947_v16, %v1112_v6  ;;  %v388_v59 = vand.u32 2147483647, %v386_v25  ;;  %v602_v22 = vsub.f32 %v952_v17, %v97_v27 }
  0xa4   :  { %267 = vrot.lane.b32.xlu0 %v263_v51, %s880_s3  ;;  %459 = vrot.lane.b32.xlu1 %v454_v52, %s880_s3  ;;  %v440_v51 = vmax.f32 %v1024_v48, %v1144_v44  ;;  %v1191_v52 = vsub.f32 %v253_v39, %v249_v36  ;;  %v470_v36 = vmin.f32 %v1024_v48, %v1144_v44  ;;  %v700_v21 = vmax.f32 %v698_v61, 0.0 }
  0xa5   :  { %v474_v39 = vmax.f32 %v1027_v49, %v1147_v50  ;;  %v1230_v38 = vsub.f32 %v254_v15, %v250_v14  ;;  %v690_v48 = vmax.f32 %v1048_v58, %v1147_v50  ;;  %v484_v49 = vmax.f32 %v482_v62, 0.0 }
  0xa6   :  { %v1209_v9 = vsub.f32 %v444_v56, %v440_v51  ;;  %v117_v44 = vrot.slane %v982_v30, %v996_v34  ;;  %v603_v58 = vand.u32 2147483647, %v601_v57  ;;  %v103_v50 = vand.u32 2147483647, %v101_v4 }
  0xa7   :  { %v1237_v19 = vsub.f32 %v474_v39, %v470_v36  ;;  %v121_v56 = vrot.slane %v982_v30, %v1021_v47  ;;  %v604_v60 = vand.u32 2147483647, %v602_v22  ;;  %v218_v57 = vmax.f32 %v1163_v8, 0.0 }
  0xa8   :  { %487 = vrot.lane.b32.xlu0 %v483_v53, %s880_s3  ;;  %675 = vrot.lane.b32.xlu1 %v670_v42, %s880_s3  ;;  %v685_v53 = vmin.f32 %v1000_v37, %v1116_v18  ;;  %v102_v37 = vand.u32 2147483647, %v100_v35  ;;  %v1241_v35 = vsub.f32 %v690_v48, %v686_v26  ;;  %v124_v42 = vsub.f32 %v919_v1, %v117_v44 }
  0xa9   :  { %v399_v51 = vsub.f32 %v932_v10, %v117_v44  ;;  %v615_v29 = vsub.f32 %v947_v16, %v117_v44  ;;  %v125_v54 = vsub.f32 %v925_v5, %v121_v56  ;;  %v400_v30 = vsub.f32 %v937_v11, %v121_v56 }
  0xaa   :  { %v1228_v18 = vsub.f32 %v689_v3, %v685_v53  ;;  %v126_v6 = vand.u32 2147483647, %v124_v42  ;;  %v616_v14 = vsub.f32 %v952_v17, %v121_v56  ;;  %v449_v25 = vmax.f32 %v1168_v13, 0.0 }
  0xab   :  { %v401_v23 = vand.u32 2147483647, %v399_v51  ;;  %v127_v53 = vand.u32 2147483647, %v125_v54  ;;  %v402_v3 = vand.u32 2147483647, %v400_v30 }
  0xac   :  { %703 = vrot.lane.b32.xlu0 %v699_v31, %s880_s3  ;;  %269 = vrot.lane.b32.xlu1 %v264_v20, %s880_s3  ;;  %v617_v31 = vand.u32 2147483647, %v615_v29  ;;  %v618_v15 = vand.u32 2147483647, %v616_v14  ;;  %v665_v22 = vmax.f32 %v1185_v45, 0.0  ;;  %v219_v13 = vmax.f32 %v1187_v46, 0.0 }
  0xad   :  { %v259_v45 = vmax.f32 %v1191_v52, 0.0  ;;  %v450_v30 = vmax.f32 %v1209_v9, 0.0  ;;  %v479_v52 = vmax.f32 %v1211_v32, 0.0  ;;  %v666_v9 = vmax.f32 %v1215_v2, 0.0 }
  0xae   :  { %v695_v32 = vmax.f32 %v1228_v18, 0.0  ;;  %v260_v2 = vmax.f32 %v1230_v38, 0.0  ;;  %v480_v38 = vmax.f32 %v1237_v19, 0.0 }
  0xb0   :  { %106 = vrot.lane.b32.xlu0 %v102_v37, %s877_s24  ;;  %489 = vrot.lane.b32.xlu1 %v484_v49, %s880_s3 }
  0xb4   :  { %391 = vrot.lane.b32.xlu0 %v387_v0, %s877_s24  ;;  %705 = vrot.lane.b32.xlu1 %v700_v21, %s880_s3  ;;  %s861_s3 = scalar_lea.vmem %s804_s27, 64 }
  0xb5   :  { %p862_p0 = scmp.ne.s32.totalorder %s804_s27, %s861_s3  ;;  %p867_p2 = scmp.lt.s32.totalorder %s861_s3, %s861_s3 }
  0xb7   :  { %p868_p3 = por %p867_p2, %p866_p1 }
  0xb8   :  { %607 = vrot.lane.b32.xlu0 %v603_v58, %s877_s24  ;;  %108 = vrot.lane.b32.xlu1 %v103_v50, %s877_s24 }
  0xb9   :  { %p869_p4 = pnand %p868_p3, %p862_p0 }
  0xbc   :  { %130 = vrot.lane.b32.xlu0 %v126_v6, %s881_s4  ;;  %393 = vrot.lane.b32.xlu1 %v388_v59, %s877_s24 }
  0xc0   :  { %405 = vrot.lane.b32.xlu0 %v401_v23, %s881_s4  ;;  %609 = vrot.lane.b32.xlu1 %v604_v60, %s877_s24 }
  0xc4   :  { %621 = vrot.lane.b32.xlu0 %v617_v31, %s881_s4  ;;  %132 = vrot.lane.b32.xlu1 %v127_v53, %s881_s4 }
  0xc8   :  { %407 = vrot.lane.b32.xlu1 %v402_v3, %s881_s4 }
  0xcc   :  { %623 = vrot.lane.b32.xlu1 %v618_v15, %s881_s4 }
  0xee   :  { %v157_v20 = vpop.permute.xlu1 %156 }
  0xef   :  { %v162_v61 = vmul.f32 %v157_v20, %v968_v24 }
  0xf1   :  { %v245_v44 = vadd.f32 %v1138_v40, %v162_v61 }
  0xf2   :  { %v159_v39 = vpop.permute.xlu1 %158 }
  0xf6   :  { %v432_v62 = vpop.permute.xlu0 %431 }
  0xf7   :  { %v437_v21 = vmul.f32 %v432_v62, %v994_v33  ;;  %v163_v33 = vmul.f32 %v159_v39, %v980_v28 }
  0xf9   :  { %v465_v24 = vadd.f32 %v437_v21, %v1138_v40  ;;  %v246_v54 = vadd.f32 %v1141_v41, %v163_v33  ;;  %v1338_v21 = vrot.slane %v1076_v7, %v996_v34 }
  0xfa   :  { %v648_v36 = vpop.permute.xlu0 %647 }
  0xfb   :  { %v653_v51 = vmul.f32 %v648_v36, %v1014_v43  ;;  %v62_v34 = vsub.f32 %v919_v1, %v1338_v21  ;;  %v696_v1 = vmax.f32 %v1241_v35, 0.0 }
  0xfd   :  { %v681_v29 = vadd.f32 %v653_v51, %v1138_v40 }
  0xfe   :  { %v1266_v37 = vpop.permute.xlu0 %82  ;;  %v434_v26 = vpop.permute.xlu1 %433 }
  0xff   :  { %v438_v31 = vmul.f32 %v434_v26, %v1041_v55 }
 0x101   :  { %v466_v15 = vadd.f32 %v438_v31, %v1141_v41 }
 0x102   :  { %v1268_v27 = vpop.permute.xlu0 %377  ;;  %v650_v48 = vpop.permute.xlu1 %649 }
 0x103   :  { %v654_v55 = vmul.f32 %v650_v48, %v1059_v63 }
 0x106   :  { %v1270_v49 = vpop.permute.xlu0 %593  ;;  %v1273_v0 = vpop.permute.xlu1 %84 }
 0x10a   :  { %v227_v4 = vpop.permute.xlu0 %226  ;;  %v1280_v50 = vpop.permute.xlu1 %379 }
 0x10b   :  { %v1278_v58 = vmul.f32 %v227_v4, %v218_v57  ;;  %v682_v57 = vadd.f32 %v654_v55, %v1141_v41 }
 0x10d   :  { %v1283_v42 = vsub.f32 %v245_v44, %v1278_v58 }
 0x10e   :  { %v458_v6 = vpop.permute.xlu0 %457  ;;  %v1291_v56 = vpop.permute.xlu1 %595 }
 0x10f   :  { %837 = vrcp.f32 %v1283_v42  ;;  %v1289_v8 = vmul.f32 %v458_v6, %v449_v25 }
 0x111   :  { %v1295_v59 = vsub.f32 %v465_v24, %v1289_v8 }
 0x112   :  { %v674_v23 = vpop.permute.xlu0 %673  ;;  %v229_v60 = vpop.permute.xlu1 %228 }
 0x113   :  { %839 = vrcp.f32 %v1295_v59  ;;  %v1301_v43 = vmul.f32 %v674_v23, %v665_v22  ;;  %v1305_v28 = vmul.f32 %v229_v60, %v219_v13 }
 0x115   :  { %v1308_v53 = vsub.f32 %v681_v29, %v1301_v43  ;;  %v1312_v46 = vsub.f32 %v246_v54, %v1305_v28 }
 0x116   :  { %v268_v40 = vpop.permute.xlu0 %267  ;;  %v460_v14 = vpop.permute.xlu1 %459 }
 0x117   :  { %841 = vrcp.f32 %v1308_v53  ;;  %v273_v3 = vmul.f32 %v268_v40, %v259_v45  ;;  %v1319_v20 = vmul.f32 %v460_v14, %v450_v30 }
 0x118   :  { %843 = vrcp.f32 %v1312_v46 }
 0x119   :  { %845 = vrcp.f32 %v273_v3  ;;  %v1323_v62 = vsub.f32 %v466_v15, %v1319_v20  ;;  %v64_v15 = vand.u32 2147483647, %v62_v34 }
 0x11a   :  { %v488_v36 = vpop.permute.xlu0 %487  ;;  %v676_v26 = vpop.permute.xlu1 %675 }
 0x11b   :  { %v493_v39 = vmul.f32 %v488_v36, %v479_v52  ;;  %847 = vrcp.f32 %v1323_v62  ;;  %v1328_v63 = vmul.f32 %v676_v26, %v666_v9 }
 0x11c   :  { %v838_v61 = vpop.eup %837 }
 0x11d   :  { %v277_v48 = vmul.f32 %v838_v61, %v1283_v42  ;;  %849 = vrcp.f32 %v493_v39  ;;  %v1333_v4 = vsub.f32 %v682_v57, %v1328_v63 }
 0x11e   :  { %v704_v44 = vpop.permute.xlu0 %703  ;;  %v270_v6 = vpop.permute.xlu1 %269 }
 0x11f   :  { %v279_v41 = vsub.f32 2.0, %v277_v48  ;;  %v709_v25 = vmul.f32 %v704_v44, %v695_v32  ;;  %851 = vrcp.f32 %v1333_v4  ;;  %v1341_v51 = vmul.f32 %v270_v6, %v260_v2 }
 0x120   :  { %v840_v24 = vpop.eup %839  ;;  %v1362_v44 = vrot.slane %v1076_v7, %v1021_v47 }
 0x121   :  { %v281_v33 = vmul.f32 %v838_v61, %v279_v41  ;;  %v497_v18 = vmul.f32 %v840_v24, %v1295_v59  ;;  %853 = vrcp.f32 %v709_v25 }
 0x122   :  { %855 = vrcp.f32 %v1341_v51  ;;  %v107_v22 = vpop.permute.xlu0 %106  ;;  %v490_v29 = vpop.permute.xlu1 %489 }
 0x123   :  { %v283_v23 = vmul.f32 %v281_v33, %v1278_v58  ;;  %v499_v13 = vsub.f32 2.0, %v497_v18  ;;  %v1349_v54 = vmul.f32 %v490_v29, %v480_v38 }
 0x124   :  { %v842_v60 = vpop.eup %841 }
 0x125   :  { %v844_v31 = vpop.eup %843  ;;  %v501_v45 = vmul.f32 %v840_v24, %v499_v13  ;;  %v713_v40 = vmul.f32 %v842_v60, %v1308_v53  ;;  %857 = vrcp.f32 %v1349_v54  ;;  %v285_v47 = vsub.f32 2.0, %v283_v23 }
 0x126   :  { %v846_v30 = vpop.eup %845  ;;  %v278_v14 = vmul.f32 %v844_v31, %v1312_v46  ;;  %v1354_v19 = vpop.permute.xlu0 %391 }
 0x127   :  { %v503_v58 = vmul.f32 %v501_v45, %v1289_v8  ;;  %v715_v55 = vsub.f32 2.0, %v713_v40  ;;  %v289_v52 = vmul.f32 %v846_v30, %v273_v3  ;;  %v706_v36 = vpop.permute.xlu1 %705  ;;  %v88_v3 = vadd.f32 %v1266_v37, %v64_v15 }
 0x128   :  { %v280_v9 = vsub.f32 2.0, %v278_v14  ;;  %v1358_v26 = vmul.f32 %v706_v36, %v696_v1  ;;  %v848_v61 = vpop.eup %847  ;;  %v63_v37 = vsub.f32 %v925_v5, %v1362_v44 }
 0x129   :  { %v717_v57 = vmul.f32 %v842_v60, %v715_v55  ;;  %v291_v48 = vsub.f32 2.0, %v289_v52  ;;  %v498_v35 = vmul.f32 %v848_v61, %v1323_v62  ;;  %v112_v13 = vadd.f32 %v107_v22, %v88_v3 }
 0x12a   :  { %v850_v32 = vpop.eup %849  ;;  %v282_v2 = vmul.f32 %v844_v31, %v280_v9  ;;  %859 = vrcp.f32 %v1358_v26  ;;  %v1366_v8 = vpop.permute.xlu0 %607  ;;  %v367_v31 = vsub.f32 %v932_v10, %v1338_v21  ;;  %v505_v10 = vsub.f32 2.0, %v503_v58 }
 0x12b   :  { %v719_v41 = vmul.f32 %v717_v57, %v1301_v43  ;;  %v293_v6 = vmul.f32 %v846_v30, %v291_v48  ;;  %v509_v24 = vmul.f32 %v850_v32, %v493_v39  ;;  %v109_v33 = vpop.permute.xlu1 %108  ;;  %v500_v38 = vsub.f32 2.0, %v498_v35 }
 0x12c   :  { %v284_v18 = vmul.f32 %v282_v2, %v1305_v28  ;;  %v852_v34 = vpop.eup %851  ;;  %v65_v52 = vand.u32 2147483647, %v63_v37  ;;  %v369_v57 = vand.u32 2147483647, %v367_v31  ;;  %v368_v58 = vsub.f32 %v937_v11, %v1362_v44 }
 0x12d   :  { %v511_v7 = vsub.f32 2.0, %v509_v24  ;;  %v295_v29 = vmul.f32 %v293_v6, %v1283_v42  ;;  %v502_v43 = vmul.f32 %v848_v61, %v500_v38  ;;  %v714_v39 = vmul.f32 %v852_v34, %v1333_v4 }
 0x12e   :  { %v854_v60 = vpop.eup %853  ;;  %v131_v45 = vpop.permute.xlu0 %130  ;;  %v89_v2 = vadd.f32 %v1273_v0, %v65_v52  ;;  %v721_v3 = vsub.f32 2.0, %v719_v41  ;;  %v286_v6 = vsub.f32 2.0, %v284_v18  ;;  %v583_v11 = vsub.f32 %v947_v16, %v1338_v21 }
 0x12f   :  { %v856_v40 = vpop.eup %855  ;;  %v513_v28 = vmul.f32 %v850_v32, %v511_v7  ;;  %v725_v30 = vmul.f32 %v854_v60, %v709_v25  ;;  %v136_v14 = vadd.f32 %v131_v45, %v112_v13  ;;  %v394_v23 = vpop.permute.xlu1 %393  ;;  %v1377_v1 = vsub.f32 %v285_v47, %v295_v29 }
 0x130   :  { %v504_v42 = vmul.f32 %v502_v43, %v1319_v20  ;;  %v716_v22 = vsub.f32 2.0, %v714_v39  ;;  %v290_v15 = vmul.f32 %v856_v40, %v1341_v51  ;;  %v113_v38 = vadd.f32 %v109_v33, %v89_v2 }
 0x131   :  { %v727_v55 = vsub.f32 2.0, %v725_v30  ;;  %302 = vperm.xlu0 %835, %v136_v14   ;;  %v515_v5 = vmul.f32 %v513_v28, %v1295_v59  ;;  %v383_v7 = vadd.f32 %v1268_v27, %v369_v57  ;;  %v370_v41 = vand.u32 2147483647, %v368_v58 }
 0x132   :  { %v718_v36 = vmul.f32 %v852_v34, %v716_v22  ;;  %v292_v9 = vsub.f32 2.0, %v290_v15  ;;  %v858_v61 = vpop.eup %857  ;;  %v506_v18 = vsub.f32 2.0, %v504_v42  ;;  %v585_v39 = vand.u32 2147483647, %v583_v11 }
 0x133   :  { %v729_v25 = vmul.f32 %v854_v60, %v727_v55  ;;  %v610_v48 = vpop.permute.xlu1 %609  ;;  %v517_v32 = vsub.f32 %v505_v10, %v515_v5  ;;  %v510_v51 = vmul.f32 %v858_v61, %v1349_v54  ;;  %v397_v33 = vadd.f32 %v1354_v19, %v383_v7 }
 0x134   :  { %v720_v20 = vmul.f32 %v718_v36, %v1328_v63  ;;  %v294_v35 = vmul.f32 %v856_v40, %v292_v9  ;;  %v384_v31 = vadd.f32 %v1280_v50, %v370_v41  ;;  %v584_v16 = vsub.f32 %v952_v17, %v1362_v44 }
 0x135   :  { %v731_v59 = vmul.f32 %v729_v25, %v1308_v53  ;;  %v512_v24 = vsub.f32 2.0, %v510_v51  ;;  %v406_v53 = vpop.permute.xlu0 %405  ;;  %v599_v19 = vadd.f32 %v1270_v49, %v585_v39 }
 0x136   :  { %v296_v34 = vmul.f32 %v294_v35, %v1312_v46  ;;  %v411_v43 = vadd.f32 %v406_v53, %v397_v33  ;;  %v722_v21 = vsub.f32 2.0, %v720_v20  ;;  %v398_v40 = vadd.f32 %v394_v23, %v384_v31 }
 0x137   :  { %v860_v47 = vpop.eup %859  ;;  %v133_v0 = vpop.permute.xlu1 %132  ;;  %v733_v13 = vsub.f32 %v721_v3, %v731_v59  ;;  %v514_v63 = vmul.f32 %v858_v61, %v512_v24  ;;  %v586_v42 = vand.u32 2147483647, %v584_v16  ;;  %v613_v50 = vadd.f32 %v1366_v8, %v599_v19 }
 0x138   :  { %v726_v29 = vmul.f32 %v860_v47, %v1358_v26  ;;  %v137_v54 = vadd.f32 %v133_v0, %v113_v38  ;;  %v298_v60 = vsub.f32 %v286_v6, %v296_v34 }
 0x139   :  { %769 = vperm.xlu0 %835, %v733_v13   ;;  %v516_v27 = vmul.f32 %v514_v63, %v1323_v62  ;;  %v622_v62 = vpop.permute.xlu0 %621  ;;  %v600_v22 = vadd.f32 %v1291_v56, %v586_v42 }
 0x13a   :  { %v728_v46 = vsub.f32 2.0, %v726_v29  ;;  %305 = vperm.xlu1 %836, %v137_v54   ;;  %v627_v15 = vadd.f32 %v622_v62, %v613_v50 }
 0x13b   :  { %v518_v26 = vsub.f32 %v506_v18, %v516_v27  ;;  %v408_v45 = vpop.permute.xlu1 %407  ;;  %v614_v55 = vadd.f32 %v610_v48, %v600_v22 }
 0x13c   :  { %v730_v37 = vmul.f32 %v860_v47, %v728_v46  ;;  %v412_v30 = vadd.f32 %v408_v45, %v398_v40 }
 0x13e   :  { %522 = vperm.xlu1 %836, %v411_v43   ;;  %v732_v28 = vmul.f32 %v730_v37, %v1333_v4 }
 0x13f   :  { %v624_v10 = vpop.permute.xlu1 %623 }
 0x140   :  { %v734_v14 = vsub.f32 %v722_v21, %v732_v28  ;;  %v628_v17 = vadd.f32 %v624_v10, %v614_v55 }
 0x142   :  { %525 = vperm.xlu1 %836, %v412_v30  }
 0x146   :  { %738 = vperm.xlu1 %836, %v627_v15  }
 0x14a   :  { %741 = vperm.xlu1 %836, %v628_v17  }
 0x14e   :  { %337 = vperm.xlu1 %836, %v1377_v1  }
 0x152   :  { %340 = vperm.xlu1 %836, %v298_v60  }
 0x156   :  { %553 = vperm.xlu1 %836, %v517_v32  }
 0x15a   :  { %556 = vperm.xlu1 %836, %v518_v26  }
 0x15e   :  { %772 = vperm.xlu1 %836, %v734_v14  }
 0x1ac   :  { %v303_v49 = vpop.permute.xlu0 %302 }
 0x1ad   :  { %v312_v44 = vrot.slane %v303_v49, %v939_v12 }
 0x1b4   :  { %v770_v7 = vpop.permute.xlu0 %769 }
 0x1b5   :  { %v306_v4 = vpop.permute.xlu1 %305  ;;  %v777_v29 = vrot.slane %v770_v7, %v939_v12 }
 0x1b6   :  { %v316_v8 = vrot.slane %v306_v4, %v939_v12 }
 0x1b8   :  { %v318_v56 = vsel %vm317_vm0, %v316_v8, %v312_v44 }
 0x1b9   :  { %v523_v23 = vpop.permute.xlu1 %522  ;;  %v321_v5 = vsel %vm320_vm1, %v318_v56, 0.0 }
 0x1ba   :  { %322 = vadd.xlane.f32.xlu0 %v321_v5  ;;  %v530_v1 = vrot.slane %v523_v23, %v939_v12 }
 0x1bd   :  { %v526_v52 = vpop.permute.xlu1 %525 }
 0x1be   :  { %v534_v36 = vrot.slane %v526_v52, %v939_v12 }
 0x1c0   :  { %v535_v9 = vsel %vm317_vm0, %v534_v36, %v530_v1 }
 0x1c1   :  { %v739_v61 = vpop.permute.xlu1 %738  ;;  %v537_v57 = vsel %vm320_vm1, %v535_v9, 0.0 }
 0x1c2   :  { %538 = vadd.xlane.f32.xlu0 %v537_v57  ;;  %v746_v48 = vrot.slane %v739_v61, %v939_v12 }
 0x1c5   :  { %v742_v25 = vpop.permute.xlu1 %741 }
 0x1c6   :  { %v750_v32 = vrot.slane %v742_v25, %v939_v12 }
 0x1c8   :  { %v751_v2 = vsel %vm317_vm0, %v750_v32, %v746_v48 }
 0x1c9   :  { %v338_v20 = vpop.permute.xlu1 %337  ;;  %v753_v35 = vsel %vm320_vm1, %v751_v2, 0.0 }
 0x1ca   :  { %754 = vadd.xlane.f32.xlu1 %v753_v35  ;;  %v345_v58 = vrot.slane %v338_v20, %v939_v12 }
 0x1cd   :  { %v341_v51 = vpop.permute.xlu1 %340 }
 0x1ce   :  { %v349_v3 = vrot.slane %v341_v51, %v939_v12 }
 0x1d0   :  { %v350_v59 = vsel %vm317_vm0, %v349_v3, %v345_v58 }
 0x1d1   :  { %v554_v6 = vpop.permute.xlu1 %553  ;;  %v352_v24 = vsel %vm320_vm1, %v350_v59, 0.0 }
 0x1d2   :  { %353 = vadd.xlane.f32.xlu1 %v352_v24  ;;  %v561_v34 = vrot.slane %v554_v6, %v939_v12 }
 0x1d5   :  { %v557_v38 = vpop.permute.xlu1 %556 }
 0x1d6   :  { %v565_v47 = vrot.slane %v557_v38, %v939_v12 }
 0x1d8   :  { %v566_v0 = vsel %vm317_vm0, %v565_v47, %v561_v34 }
 0x1d9   :  { %v773_v13 = vpop.permute.xlu1 %772  ;;  %v568_v63 = vsel %vm320_vm1, %v566_v0, 0.0 }
 0x1da   :  { %v781_v54 = vrot.slane %v773_v13, %v939_v12  ;;  %569 = vadd.xlane.f32.xlu1 %v568_v63 }
 0x1dc   :  { %v782_v60 = vsel %vm317_vm0, %v781_v54, %v777_v29 }
 0x1dd   :  { %v784_v11 = vsel %vm320_vm1, %v782_v60, 0.0 }
 0x1de   :  { %785 = vadd.xlane.f32.xlu1 %v784_v11 }
 0x243   :  { %v323_v41 = vpop.xlane.xlu0 %322 }
 0x244   :  { %v324_v53 = vrot.slane %v323_v41, 4 }
 0x246   :  { %v325_v18 = vadd.f32 %v324_v53, %v323_v41 }
 0x248   :  { %v326_v33 = vrot.slane %v325_v18, 2 }
 0x24a   :  { %v327_v46 = vadd.f32 %v326_v33, %v325_v18 }
 0x24b   :  { %v539_v37 = vpop.xlane.xlu0 %538 }
 0x24c   :  { %v328_v27 = vrot.slane %v327_v46, 1  ;;  %v540_v43 = vrot.slane %v539_v37, 4 }
 0x24e   :  { %v329_v31 = vadd.f32 %v328_v27, %v327_v46  ;;  %v541_v26 = vadd.f32 %v540_v43, %v539_v37 }
 0x250   :  { %812 = vpush %v329_v31  ;;  %v542_v45 = vrot.slane %v541_v26, 2 }
 0x252   :  { %v543_v28 = vadd.f32 %v542_v45, %v541_v26 }
 0x253   :  { %v755_v39 = vpop.xlane.xlu1 %754 }
 0x254   :  { %v756_v12 = vrot.slane %v755_v39, 4  ;;  %v544_v50 = vrot.slane %v543_v28, 1 }
 0x256   :  { %v757_v19 = vadd.f32 %v756_v12, %v755_v39  ;;  %v545_v49 = vadd.f32 %v544_v50, %v543_v28 }
 0x258   :  { %v758_v62 = vrot.slane %v757_v19, 2 }
 0x25a   :  { %v759_v4 = vadd.f32 %v758_v62, %v757_v19 }
 0x25b   :  { %v354_v16 = vpop.xlane.xlu1 %353 }
 0x25c   :  { %v355_v21 = vrot.slane %v354_v16, 4  ;;  %v760_v5 = vrot.slane %v759_v4, 1 }
 0x25e   :  { %v356_v40 = vadd.f32 %v355_v21, %v354_v16  ;;  %v761_v61 = vadd.f32 %v760_v5, %v759_v4 }
 0x260   :  { %v357_v30 = vrot.slane %v356_v40, 2 }
 0x262   :  { %v358_v14 = vadd.f32 %v357_v30, %v356_v40 }
 0x263   :  { %v570_v42 = vpop.xlane.xlu1 %569 }
 0x264   :  { %v571_v22 = vrot.slane %v570_v42, 4  ;;  %v359_v15 = vrot.slane %v358_v14, 1 }
 0x266   :  { %v572_v10 = vadd.f32 %v571_v22, %v570_v42  ;;  %v360_v55 = vadd.f32 %v359_v15, %v358_v14 }
 0x267   :  { %v786_v17 = vpop.xlane.xlu1 %785 }
 0x268   :  { %v573_v44 = vrot.slane %v572_v10, 2  ;;  %v787_v8 = vrot.slane %v786_v17, 4  ;;  %814 = vpush %v360_v55 }
 0x269   :  { %816 = vpush %v545_v49 }
 0x26a   :  { %v788_v56 = vadd.f32 %v787_v8, %v786_v17  ;;  %v574_v23 = vadd.f32 %v573_v44, %v572_v10 }
 0x26c   :  { %v789_v52 = vrot.slane %v788_v56, 2  ;;  %v575_v1 = vrot.slane %v574_v23, 1 }
 0x26e   :  { %v790_v36 = vadd.f32 %v789_v52, %v788_v56  ;;  %v576_v9 = vadd.f32 %v575_v1, %v574_v23 }
 0x270   :  { %818 = vpush %v576_v9  ;;  %v791_v57 = vrot.slane %v790_v36, 1 }
 0x271   :  { %820 = vpush %v761_v61 }
 0x272   :  { %v792_v25 = vadd.f32 %v791_v57, %v790_v36 }
 0x274   :  { %822 = vpush %v792_v25 }
 0x281   :  { %s813_s6 = spop %812 }
 0x282   :  { %s331_s9 = smul.f32 %s813_s6, %s1448_s0 }
 0x284   :  { %333 = sst [smem:[#allocation3]] %s331_s9 }
 0x299   :  { %s815_s10 = spop %814 }
 0x29a   :  { %s362_s13 = smul.f32 %s815_s10, %s1448_s0  ;;  %s817_s14 = spop %816 }
 0x29b   :  { %s547_s17 = smul.f32 %s817_s14, %s1448_s0 }
 0x29c   :  { %364 = sst [smem:[#allocation3 + $0x1]] %s362_s13 }
 0x29d   :  { %549 = sst [smem:[#allocation3 + $0x80]] %s547_s17 }
 0x2a1   :  { %s819_s18 = spop %818 }
 0x2a2   :  { %s578_s21 = smul.f32 %s819_s18, %s1448_s0  ;;  %s821_s22 = spop %820 }
 0x2a3   :  { %s763_s1 = smul.f32 %s821_s22, %s1448_s0 }
 0x2a4   :  { %580 = sst [smem:[#allocation3 + $0x81]] %s578_s21 }
 0x2a5   :  { %765 = sst [smem:[#allocation3 + $0x100]] %s763_s1  ;;  %s823_s2 = spop %822 }
 0x2a6   :  { %s794_s30 = smul.f32 %s823_s2, %s1448_s0 }
 0x2a8   :  { %796 = sst [smem:[#allocation3 + $0x101]] %s794_s30 }
 0x2a9   :  { %872 = shalt.err (!%p869_p4)
}
 0x2aa   :  { %s882_s4 = smov [#allocation3]  }
 0x2ab   :  { %806 = dma.smem_to_vmem %s882_s4, 64, %s804_s27, [#allocation4]  }
 0x2ac   :  { %873 = dma.done.wait [#allocation4], 64  }
 0x2ad   :  { %874 = vsyncadd [#allocation4], 4294967232 }
 0x2ae   :  { %810 = sfence }
 0x2af   :  { %811 = vsyncpa [#allocation4], 1 }

</bundles_post_ra>
